<compile_context>
chip_gen: v5e
topology: v5e:2x2
jax: 0.10.0
libtpu: 0.0.40
codegen_flags: <defaults>
</compile_context>

<pallas_src>
import functools
import math

import jax
import jax.numpy as jnp
from jax.experimental import pallas as pl
from jax.experimental.pallas import tpu as pltpu


_BLOCK_BUDGET_BYTES = 8 << 20   # per input block (double-buffered by Pallas)
_ROW_TILE_CAP = 8192            # sanity cap on the sublane block dim


def _round_up(a: int, b: int) -> int:
    return ((a + b - 1) // b) * b


def _cdiv(a: int, b: int) -> int:
    return -(-a // b)


def _vmem_capacity_bytes() -> int:
    try:
        return int(pltpu.get_tpu_info().vmem_capacity_bytes)
    except Exception:
        return 128 << 20   # v5e/v6e default if the query is unavailable


def _gap_kernel(x_ref, o_ref, acc_ref, *, hw, hw_tile, acc_w, hw_steps, inv_hw):
    """One (row_tile, hw_tile) block; grid = (row_tiles, hw_steps), HW axis reduced."""
    k = pl.program_id(1)
    last = hw_steps - 1
    tail_valid = hw - last * hw_tile   # valid lanes in the final HW block (1..hw_tile)

    @pl.when(k == 0)
    def _init():
        acc_ref[...] = jnp.zeros_like(acc_ref)

    def _accumulate(valid):
        # Sum the `valid` leading lanes of this block into the lane-dense accumulator
        # via static acc_w-wide slice adds (VPU); `valid` is a compile-time constant.
        partial = None
        full = valid // acc_w
        for j in range(full):
            c = x_ref[:, j * acc_w:(j + 1) * acc_w].astype(jnp.float32)
            partial = c if partial is None else partial + c
        rem = valid - full * acc_w
        if rem:
            c = x_ref[:, full * acc_w:(full + 1) * acc_w].astype(jnp.float32)
            lane = jax.lax.broadcasted_iota(jnp.int32, c.shape, 1)
            c = jnp.where(lane < rem, c, 0.0)
            partial = c if partial is None else partial + c
        acc_ref[...] += partial

    if tail_valid == hw_tile:
        # HW divides evenly: every step is a full, unmasked accumulate.
        _accumulate(hw_tile)
    else:
        # Steady state stays mask-free; only the last step pays for the tail mask.
        @pl.when(k < last)
        def _steady():
            _accumulate(hw_tile)

        @pl.when(k == last)
        def _tail():
            _accumulate(tail_valid)

    @pl.when(k == last)
    def _finalize():
        total = jnp.sum(acc_ref[...], axis=-1, keepdims=True)   # single XLU lane-reduce
        o_ref[...] = (total * jnp.float32(inv_hw)).astype(o_ref.dtype)


def _global_average_pool_pallas(x: jax.Array) -> jax.Array:
    *lead, h, w = x.shape
    R = int(math.prod(lead)) if lead else 1
    HW = h * w

    x2 = x.reshape(R, HW)   # free for contiguous input; lane axis carries HW

    itemsize = jnp.dtype(x.dtype).itemsize
    sublane = max(8, 32 // itemsize)                 # packed sublane count (8/16/32)
    budget_elems = _BLOCK_BUDGET_BYTES // itemsize

    # Lane (HW) tile: as much of HW as fits the byte budget at ~512 rows.
    if HW < 128:
        hw_tile = HW                                  # full-dim lane block (legal)
    else:
        hw_cap = max(128, (budget_elems // 512) // 128 * 128)
        hw_tile = min(_round_up(HW, 128), hw_cap)
    acc_w = min(128, hw_tile)

    # Row tile: fill the remaining budget at packed-sublane granularity; no padding —
    # a non-multiple R just yields a partial edge block.
    rows_budget = max(
        sublane, min(_ROW_TILE_CAP, (budget_elems // hw_tile) // sublane * sublane)
    )
    if R <= sublane:
        row_tile = R                                  # full-dim row block (legal for any R)
    else:
        row_tile = min(rows_budget, (R // sublane) * sublane)
        # Give both v7x TensorCores a row tile when the row count allows it.
        if _cdiv(R, row_tile) < 2 and R >= 2 * sublane:
            row_tile = _round_up(_cdiv(R, 2), sublane)

    hw_steps = _cdiv(HW, hw_tile)
    grid = (_cdiv(R, row_tile), hw_steps)

    kernel = functools.partial(
        _gap_kernel, hw=HW, hw_tile=hw_tile, acc_w=acc_w,
        hw_steps=hw_steps, inv_hw=1.0 / float(HW),
    )

    # Generation-aware scoped-VMEM ceiling: 32 MiB on v7x (64 MiB physical),
    # 48 MiB on v5e/v6e (128 MiB physical). Usage: 2 x 8 MiB input buffers + scratch.
    vmem_limit = min(48 << 20, max(32 << 20, _vmem_capacity_bytes() // 2))

    out = pl.pallas_call(
        kernel,
        out_shape=jax.ShapeDtypeStruct((R, 1), x.dtype),
        grid_spec=pltpu.PrefetchScalarGridSpec(
            num_scalar_prefetch=0,
            grid=grid,
            in_specs=[pl.BlockSpec((row_tile, hw_tile), lambda i, k: (i, k))],
            out_specs=pl.BlockSpec((row_tile, 1), lambda i, k: (i, 0)),
            scratch_shapes=[pltpu.VMEM((row_tile, acc_w), jnp.float32)],
        ),
        compiler_params=pltpu.CompilerParams(
            dimension_semantics=("parallel", "arbitrary"),
            vmem_limit_bytes=vmem_limit,
        ),
    )(x2)

    return out.reshape(*lead, 1, 1)


def _pallas_min_bytes() -> int:
    # On fast-HBM v7x (64 MiB VMEM) the fused XLA reduction wins out to larger sizes.
    return (8 << 20) if _vmem_capacity_bytes() <= (64 << 20) else (2 << 20)


def global_average_pool(x: jax.Array) -> jax.Array:
    """Equivalent of torch.mean(x, dim=[-2, -1], keepdim=True)."""
    if x.size * jnp.dtype(x.dtype).itemsize < _pallas_min_bytes():
        # Small inputs: kernel-launch + per-grid-step overhead dominates; let XLA fuse it.
        return jnp.mean(x, axis=(-2, -1), keepdims=True)
    return _global_average_pool_pallas(x)


if __name__ == "__main__":
    key = jax.random.PRNGKey(0)

    # Exercise the Pallas path directly on small shapes consistent with the module:
    #  - the canonical (2, 4, 16, 16) case,
    #  - a multi-step HW reduction with a masked tail,
    #  - R < sublane (full-dim row block) with non-aligned HW,
    #  - R not a multiple of the sublane count (partial row edge block, no padding),
    #  - a shape that triggers the megacore row split,
    #  - a packed dtype (bf16) to exercise dtype-aware tiling.
    f32_shapes = [
        (2, 4, 16, 16),   # canonical
        (2, 4, 70, 70),   # HW=4900 > hw_tile -> 2 reduction steps + masked tail
        (2, 3, 17, 19),   # R=6 (< 8), HW tail mask
        (2, 5, 16, 16),   # R=10 -> partial row edge block
        (6, 4, 16, 16),   # R=24 -> megacore row split (grid[0] >= 2)
    ]
    for i, shape in enumerate(f32_shapes):
        k = jax.random.fold_in(key, i)
        x = jax.random.normal(k, shape, dtype=jnp.float32)
        out = jax.block_until_ready(_global_average_pool_pallas(x))
        ref = jnp.mean(x, axis=(-2, -1), keepdims=True)
        assert out.shape == ref.shape, (shape, out.shape)
        assert out.dtype == x.dtype, out.dtype
        assert jnp.allclose(out, ref, atol=1e-5, rtol=1e-5), (shape, "mismatch vs ref")

    # bf16 path (packed sublane = 16).
    xb = jax.random.normal(jax.random.fold_in(key, 100), (2, 16, 64, 64), jnp.bfloat16)
    outb = jax.block_until_ready(_global_average_pool_pallas(xb))
    refb = jnp.mean(xb.astype(jnp.float32), axis=(-2, -1), keepdims=True)
    assert outb.shape == refb.shape and outb.dtype == jnp.bfloat16
    assert jnp.allclose(outb.astype(jnp.float32), refb, atol=1e-2, rtol=1e-2)

    # Dispatcher path (small input falls back to the fused XLA reduction).
    x = jax.random.normal(key, (2, 4, 16, 16), dtype=jnp.float32)
    out = jax.block_until_ready(global_average_pool(x))
    ref = jnp.mean(x, axis=(-2, -1), keepdims=True)
    assert out.shape == (2, 4, 1, 1)
    assert jnp.allclose(out, ref, atol=1e-6, rtol=1e-6)

    print("KERNEL_OK")
</pallas_src>

<mosaic_0001>
module attributes {stable_mosaic.version = 11 : i64} {
  func.func @_gap_kernel(%arg0: i32, %arg1: i32, %arg2: memref<8x256xf32, #tpu.memory_space<vmem>>, %arg3: memref<8x1xf32, #tpu.memory_space<vmem>>, %arg4: memref<8x128xf32, #tpu.memory_space<vmem>>) attributes {dimension_semantics = [#tpu.dimension_semantics<parallel>, #tpu.dimension_semantics<arbitrary>], iteration_bounds = array<i64: 1, 1>, scalar_prefetch = 0 : i64, scratch_operands = 1 : i64, tpu.core_type = #tpu.core_type<tc>, window_params = [{transform_indices = @transform_0, window_bounds = array<i64: 8, 256>}, {transform_indices = @transform_1, window_bounds = array<i64: 8, 1>}]} {
    %c0_i32 = arith.constant 0 : i32
    %0 = arith.cmpi eq, %arg1, %c0_i32 : i32
    %1 = arith.extui %0 : i1 to i32
    %c0_i32_0 = arith.constant 0 : i32
    %2 = arith.cmpi ne, %1, %c0_i32_0 : i32
    scf.if %2 {
      %cst = arith.constant 0.000000e+00 : f32
      %12 = vector.broadcast %cst : f32 to vector<8x128xf32>
      %c0_9 = arith.constant 0 : index
      %c0_10 = arith.constant 0 : index
      %13 = vector.load %arg4[%c0_9, %c0_10] : memref<8x128xf32, #tpu.memory_space<vmem>>, vector<8x128xf32>
      tpu.vector_store %arg4[%c0_9, %c0_10], %12 {strides = array<i32>} : memref<8x128xf32, #tpu.memory_space<vmem>>, vector<8x128xf32>,
    } else {
    }
    %c0 = arith.constant 0 : index
    %c0_1 = arith.constant 0 : index
    %3 = vector.load %arg2[%c0, %c0_1] : memref<8x256xf32, #tpu.memory_space<vmem>>, vector<8x128xf32>
    %c0_2 = arith.constant 0 : index
    %c128 = arith.constant 128 : index
    %4 = vector.load %arg2[%c0_2, %c128] : memref<8x256xf32, #tpu.memory_space<vmem>>, vector<8x128xf32>
    %5 = arith.addf %3, %4 : vector<8x128xf32>
    %c0_3 = arith.constant 0 : index
    %c0_4 = arith.constant 0 : index
    %6 = vector.load %arg4[%c0_3, %c0_4] : memref<8x128xf32, #tpu.memory_space<vmem>>, vector<8x128xf32>
    %7 = arith.addf %6, %5 : vector<8x128xf32>
    %c0_5 = arith.constant 0 : index
    %c0_6 = arith.constant 0 : index
    %8 = vector.load %arg4[%c0_5, %c0_6] : memref<8x128xf32, #tpu.memory_space<vmem>>, vector<8x128xf32>
    tpu.vector_store %arg4[%c0_5, %c0_6], %7 {strides = array<i32>} : memref<8x128xf32, #tpu.memory_space<vmem>>, vector<8x128xf32>,
    %c0_i32_7 = arith.constant 0 : i32
    %9 = arith.cmpi eq, %arg1, %c0_i32_7 : i32
    %10 = arith.extui %9 : i1 to i32
    %c0_i32_8 = arith.constant 0 : i32
    %11 = arith.cmpi ne, %10, %c0_i32_8 : i32
    scf.if %11 {
      %c0_9 = arith.constant 0 : index
      %c0_10 = arith.constant 0 : index
      %12 = vector.load %arg4[%c0_9, %c0_10] : memref<8x128xf32, #tpu.memory_space<vmem>>, vector<8x128xf32>
      %cst = arith.constant dense<0.000000e+00> : vector<8xf32>
      %13 = vector.multi_reduction <add>, %12, %cst [1] : vector<8x128xf32> to vector<8xf32>
      %14 = vector.shape_cast %13 : vector<8xf32> to vector<8x1xf32>
      %cst_11 = arith.constant 3.906250e-03 : f32
      %15 = vector.broadcast %cst_11 : f32 to vector<8x1xf32>
      %16 = arith.mulf %14, %15 : vector<8x1xf32>
      %c0_12 = arith.constant 0 : index
      %c0_13 = arith.constant 0 : index
      %17 = vector.load %arg3[%c0_12, %c0_13] : memref<8x1xf32, #tpu.memory_space<vmem>>, vector<8x1xf32>
      tpu.vector_store %arg3[%c0_12, %c0_13], %16 {strides = array<i32>} : memref<8x1xf32, #tpu.memory_space<vmem>>, vector<8x1xf32>,
    } else {
    }
    return
  }
  func.func @transform_0(%arg0: i32, %arg1: i32) -> (i32, i32) {
    %c0_i32 = arith.constant 0 : i32
    return %arg0, %arg1 : i32, i32
  }
  func.func @transform_1(%arg0: i32, %arg1: i32) -> (i32, i32) {
    %c0_i32 = arith.constant 0 : i32
    %c0_i32_0 = arith.constant 0 : i32
    return %arg0, %c0_i32 : i32, i32
  }
}

</mosaic_0001>

<bundles_post_ra>
// kernel: tpu_custom_call.1
= control target key start
LH: loop header
LB: loop body
LE: loop exit
PB: predicated region body
PF: predicated region fallthrough
CT: control target
= control target key end

     0   :  { %6 = vsyncpa [#allocation4], 0  ;;  %s74_s9 = smov [#allocation3]   ;;  %s91_s0 = inlined_call_operand.hbm [shape: f32[8,256], index: 0, kind: input, shape index: {}]   ;;  %s92_s1 = inlined_call_operand.vmem [shape: f32[8,1], index: 1, kind: output, shape index: {}]  }
   0x1   :  { %s12_s8 = sshll.u32 %s91_s0, 4  ;;  %s14_s10 = sshll.u32 %s74_s9, 4  ;;  %s13_s8 = int_to_ptr.hbm [resolvable:$true] %s12_s8  ;;  %s15_s10 = int_to_ptr.vmem [resolvable:$true] %s14_s10 }
   0x2   :  { %17 = dma.hbm_to_vmem [thread:$0]  %s13_s8, 256, %s15_s10, [#allocation4]  }
   0x3   :  { %72 = dma.done.wait [#allocation4], 256  }
   0x4   :  { %73 = vsyncadd [#allocation4], 4294967040  ;;  %v27_v0 = vld [vmem:[#allocation3] sm:$0xff]  ;;  %v28_v1 = vld [vmem:[#allocation3 + $0x8] sm:$0xff]  ;;  %vm40_vm0 = vcmask 7168  }
   0x5   :  { %v29_v2 = vadd.f32 %v28_v1, %v27_v0 }
   0x7   :  { %37 = vadd.xlane.f32.xlu0 %v29_v2 }
  0x7a   :  { %v38_v3 = vpop.xlane.xlu0 %37 }
  0x7b   :  { %v39_v4 = vmul.f32 0.00390625, %v38_v3 }
  0x7d   :  { %41 = vst.msk [vmem:[%s92_s1] sm:$0xff] %vm40_vm0, %v39_v4 }
  0x7e   :  { %46 = vsyncpa [#allocation4], 1 }

</bundles_post_ra>
